<compile_context>
chip_gen: v7x
topology: tpu7x:2x2x1
jax: 0.10.0
libtpu: 0.0.40
codegen_flags: <defaults>
</compile_context>

<pallas_src>
import jax
import jax.numpy as jnp
import numpy as np
from jax.experimental import pallas as pl
from jax.experimental.pallas import tpu as pltpu

# ----- small synthetic config (consistent with the module's shapes) -----
B        = 2              # batch of image features
N_CLS    = 3              # number of classes
N_CTX    = 4              # context tokens
CTX_DIM  = 128            # ln_final width (lane-aligned)
VIS_DIM  = 64             # visual.output_dim
HIDDEN   = VIS_DIM // 16  # meta_net bottleneck (= 4)
SEQ_LEN  = 16             # tokenized prompt length (1 prefix + N_CTX + suffix)
SUF_LEN  = SEQ_LEN - 1 - N_CTX

DTYPE = jnp.float32

# ---- packed-parameter layout: one (P_ROWS, 128) f32 slab, every segment ----
# ---- starts on a sublane(8)-aligned row, zero padding everywhere else   ----
OFF_W1  = 0                       # rows [0,   64): w1  (VIS_DIM, CTX_DIM), cols >= HIDDEN are 0
OFF_B1  = OFF_W1 + VIS_DIM        # row   64       : b1  (1, CTX_DIM),       cols >= HIDDEN are 0
OFF_W2  = OFF_B1 + 8              # rows [72, 200): w2  (CTX_DIM, CTX_DIM),  rows >= HIDDEN are 0
OFF_B2  = OFF_W2 + CTX_DIM        # row  200       : b2  (1, CTX_DIM)
OFF_CTX = OFF_B2 + 8              # rows [208,212): ctx (N_CTX, CTX_DIM)
P_ROWS  = OFF_CTX + 8             # 216


# --------------------- fused kernel: meta_net + ctx-slice writeback ---------------------
def prompt_learner_kernel(x_ref, p_ref, tmpl_ref, out_hbm, ctx_vmem, sem):
    # tmpl_ref (the prefilled prefix/suffix template) is aliased to out_hbm and
    # is never read: its contents are already the correct output everywhere
    # outside the ctx rows, so the kernel only has to produce the ctx slice.
    del tmpl_ref

    # ---- meta_net: Linear(vis_dim -> hidden) -> ReLU -> Linear(hidden -> ctx_dim) ----
    x  = x_ref[...]                                                    # (B, VIS_DIM)
    w1 = p_ref[OFF_W1:OFF_W1 + VIS_DIM, :]                             # (VIS_DIM, 128), zero-padded cols
    b1 = p_ref[OFF_B1:OFF_B1 + 1, :]                                   # (1, 128), zero-padded cols
    h  = jnp.maximum(jnp.dot(x, w1, preferred_element_type=jnp.float32) + b1, 0.0)  # (B, 128)

    # Lane-perfect MXU pass: rows >= HIDDEN of w2 are zero, so the padded
    # columns of h contribute nothing.
    w2 = p_ref[OFF_W2:OFF_W2 + CTX_DIM, :]                             # (128, 128)
    b2 = p_ref[OFF_B2:OFF_B2 + 1, :]                                   # (1, 128)
    bias = jnp.dot(h, w2, preferred_element_type=jnp.float32) + b2     # (B, 128)

    # ---- ctx shift, broadcast over classes, single lane-dense store ----
    ctx = p_ref[OFF_CTX:OFF_CTX + N_CTX, :]                            # (N_CTX, 128)
    ctx_shifted = ctx[None, :, :] + bias[:, None, :]                   # (B, N_CTX, 128)
    ctx_vmem[...] = jnp.broadcast_to(
        ctx_shifted[:, None, :, :], (B, N_CLS, N_CTX, CTX_DIM)).astype(ctx_vmem.dtype)

    # Write ONLY the ctx rows of the (aliased) output; prefix/suffix are
    # already in HBM via the template alias.
    cp = pltpu.make_async_copy(ctx_vmem, out_hbm.at[:, :, 1:1 + N_CTX, :], sem)
    cp.start()
    cp.wait()


def pack_params(params):
    """Pack w1/b1/w2/b2/ctx into one sublane-aligned, zero-padded slab (done once)."""
    packed = jnp.zeros((P_ROWS, CTX_DIM), DTYPE)
    packed = packed.at[OFF_W1:OFF_W1 + VIS_DIM, :HIDDEN].set(params["w1"])
    packed = packed.at[OFF_B1, :HIDDEN].set(params["b1"])
    packed = packed.at[OFF_W2:OFF_W2 + HIDDEN, :].set(params["w2"])
    packed = packed.at[OFF_B2, :].set(params["b2"])
    packed = packed.at[OFF_CTX:OFF_CTX + N_CTX, :].set(params["ctx"])
    return packed


@jax.jit
def prompt_learner_forward(im_features, packed_params, token_prefix, token_suffix):
    # Template with the frozen prefix/suffix already placed (cheap XLA fill,
    # freshly produced here so it aliases cleanly into the kernel output).
    template = jnp.zeros((B, N_CLS, SEQ_LEN, CTX_DIM), DTYPE)
    template = template.at[:, :, 0:1, :].set(
        jnp.broadcast_to(token_prefix[None], (B, N_CLS, 1, CTX_DIM)))
    template = template.at[:, :, 1 + N_CTX:, :].set(
        jnp.broadcast_to(token_suffix[None], (B, N_CLS, SUF_LEN, CTX_DIM)))

    # Single invocation (no grid): x + packed params (~110 KiB) live in VMEM as
    # full-array blocks; the output stays in HBM (ANY) and only its ctx slice
    # is written by an in-kernel DMA. At real CoCoOp sizes, add a
    # (B, n_cls_tiles) grid with dimension_semantics=("parallel","parallel")
    # and per-class output tiling (v7x: 64 MiB physical / 32 MiB scoped VMEM).
    return pl.pallas_call(
        prompt_learner_kernel,
        out_shape=jax.ShapeDtypeStruct((B, N_CLS, SEQ_LEN, CTX_DIM), DTYPE),
        in_specs=[
            pl.BlockSpec(memory_space=pltpu.MemorySpace.VMEM),   # im_features
            pl.BlockSpec(memory_space=pltpu.MemorySpace.VMEM),   # packed params
            pl.BlockSpec(memory_space=pl.ANY),                   # template (alias only)
        ],
        out_specs=pl.BlockSpec(memory_space=pl.ANY),             # raw HBM, written via DMA
        scratch_shapes=[
            pltpu.VMEM((B, N_CLS, N_CTX, CTX_DIM), DTYPE),       # ctx-slice staging buffer
            pltpu.SemaphoreType.DMA(()),
        ],
        input_output_aliases={2: 0},                             # template -> prompts
        compiler_params=pltpu.CompilerParams(vmem_limit_bytes=32 * 1024 * 1024),
    )(im_features, packed_params, template)


if __name__ == "__main__":
    key = jax.random.PRNGKey(0)
    ks = jax.random.split(key, 8)

    # deterministic synthetic parameters (shapes as in PromptLearner.__init__)
    # TODO(synk): tokenizer / CLIP token_embedding used to build token_prefix /
    # token_suffix in __init__ have no Pallas equivalent; frozen buffers are
    # synthesized with random values here.
    params = {
        "ctx":          0.02 * jax.random.normal(ks[0], (N_CTX, CTX_DIM), DTYPE),
        "w1":           0.05 * jax.random.normal(ks[1], (VIS_DIM, HIDDEN), DTYPE),
        "b1":           jnp.zeros((HIDDEN,), DTYPE),
        "w2":           0.05 * jax.random.normal(ks[2], (HIDDEN, CTX_DIM), DTYPE),
        "b2":           jnp.zeros((CTX_DIM,), DTYPE),
        "token_prefix": jax.random.normal(ks[3], (N_CLS, 1, CTX_DIM), DTYPE),
        "token_suffix": jax.random.normal(ks[4], (N_CLS, SUF_LEN, CTX_DIM), DTYPE),
    }
    im_features = jax.random.normal(ks[5], (B, VIS_DIM), DTYPE)

    packed = jax.block_until_ready(pack_params(params))   # packed once (frozen per step)

    prompts = jax.block_until_ready(
        prompt_learner_forward(im_features, packed,
                               params["token_prefix"], params["token_suffix"]))
    assert prompts.shape == (B, N_CLS, SEQ_LEN, CTX_DIM)

    # pure-JAX reference for sanity
    h_ref = jnp.maximum(im_features @ params["w1"] + params["b1"], 0.0)
    bias_ref = h_ref @ params["w2"] + params["b2"]                      # (B, CTX_DIM)
    ctx_shifted = params["ctx"][None] + bias_ref[:, None, :]            # (B, N_CTX, CTX_DIM)
    ref = jnp.stack([
        jnp.concatenate(
            [params["token_prefix"],
             jnp.broadcast_to(ctx_shifted[i][None], (N_CLS, N_CTX, CTX_DIM)),
             params["token_suffix"]], axis=1)
        for i in range(B)
    ], axis=0)
    np.testing.assert_allclose(np.asarray(prompts), np.asarray(ref), atol=1e-3, rtol=1e-3)

    print("KERNEL_OK")
</pallas_src>

<mosaic_0001>
module attributes {stable_mosaic.version = 11 : i64} {
  func.func @prompt_learner_kernel(%arg0: memref<2x64xf32, #tpu.memory_space<vmem>>, %arg1: memref<216x128xf32, #tpu.memory_space<vmem>>, %arg2: memref<2x3x16x128xf32, #tpu.memory_space<any>>, %arg3: memref<2x3x16x128xf32, #tpu.memory_space<any>>, %arg4: memref<2x3x4x128xf32, #tpu.memory_space<vmem>>, %arg5: memref<!tpu.dma_semaphore, #tpu.memory_space<semaphore_mem>>) attributes {dimension_semantics = [], scalar_prefetch = 0 : i64, scratch_operands = 2 : i64, tpu.core_type = #tpu.core_type<tc>} {
    %c0 = arith.constant 0 : index
    %c0_0 = arith.constant 0 : index
    %0 = vector.load %arg0[%c0, %c0_0] : memref<2x64xf32, #tpu.memory_space<vmem>>, vector<2x64xf32>
    %c0_1 = arith.constant 0 : index
    %c0_2 = arith.constant 0 : index
    %1 = vector.load %arg1[%c0_1, %c0_2] : memref<216x128xf32, #tpu.memory_space<vmem>>, vector<64x128xf32>
    %c64 = arith.constant 64 : index
    %c0_3 = arith.constant 0 : index
    %2 = vector.load %arg1[%c64, %c0_3] : memref<216x128xf32, #tpu.memory_space<vmem>>, vector<1x128xf32>
    %cst = arith.constant dense<0.000000e+00> : vector<2x128xf32>
    %3 = tpu.matmul %0, %1, %cst {dimension_numbers = #tpu.dot_dimension_numbers<[1], [0], [0], [1], [0, 0, 1, 1], [], []>} : vector<2x64xf32>, vector<64x128xf32>, vector<2x128xf32> -> vector<2x128xf32>
    %4 = vector.broadcast %2 : vector<1x128xf32> to vector<2x128xf32>
    %5 = arith.addf %3, %4 : vector<2x128xf32>
    %cst_4 = arith.constant 0.000000e+00 : f32
    %6 = vector.broadcast %cst_4 : f32 to vector<2x128xf32>
    %7 = arith.maximumf %5, %6 : vector<2x128xf32>
    %c72 = arith.constant 72 : index
    %c0_5 = arith.constant 0 : index
    %8 = vector.load %arg1[%c72, %c0_5] : memref<216x128xf32, #tpu.memory_space<vmem>>, vector<128x128xf32>
    %c200 = arith.constant 200 : index
    %c0_6 = arith.constant 0 : index
    %9 = vector.load %arg1[%c200, %c0_6] : memref<216x128xf32, #tpu.memory_space<vmem>>, vector<1x128xf32>
    %cst_7 = arith.constant dense<0.000000e+00> : vector<2x128xf32>
    %10 = tpu.matmul %7, %8, %cst_7 {dimension_numbers = #tpu.dot_dimension_numbers<[1], [0], [0], [1], [0, 0, 1, 1], [], []>} : vector<2x128xf32>, vector<128x128xf32>, vector<2x128xf32> -> vector<2x128xf32>
    %11 = vector.broadcast %9 : vector<1x128xf32> to vector<2x128xf32>
    %12 = arith.addf %10, %11 : vector<2x128xf32>
    %c208 = arith.constant 208 : index
    %c0_8 = arith.constant 0 : index
    %13 = vector.load %arg1[%c208, %c0_8] : memref<216x128xf32, #tpu.memory_space<vmem>>, vector<4x128xf32>
    %14 = vector.shape_cast %13 : vector<4x128xf32> to vector<1x4x128xf32>
    %15 = vector.shape_cast %12 : vector<2x128xf32> to vector<2x1x128xf32>
    %16 = vector.broadcast %14 : vector<1x4x128xf32> to vector<2x4x128xf32>
    %17 = vector.broadcast %15 : vector<2x1x128xf32> to vector<2x4x128xf32>
    %18 = arith.addf %16, %17 : vector<2x4x128xf32>
    %19 = vector.shape_cast %18 : vector<2x4x128xf32> to vector<2x1x4x128xf32>
    %20 = vector.shape_cast %19 : vector<2x1x4x128xf32> to vector<2x1x4x128xf32>
    %21 = vector.broadcast %20 : vector<2x1x4x128xf32> to vector<2x3x4x128xf32>
    %c0_9 = arith.constant 0 : index
    %c0_10 = arith.constant 0 : index
    %c0_11 = arith.constant 0 : index
    %c0_12 = arith.constant 0 : index
    %22 = vector.load %arg4[%c0_9, %c0_10, %c0_11, %c0_12] : memref<2x3x4x128xf32, #tpu.memory_space<vmem>>, vector<2x3x4x128xf32>
    tpu.vector_store %arg4[%c0_9, %c0_10, %c0_11, %c0_12], %21 {strides = array<i32>} : memref<2x3x4x128xf32, #tpu.memory_space<vmem>>, vector<2x3x4x128xf32>,
    %c0_i32 = arith.constant 0 : i32
    %c0_i32_13 = arith.constant 0 : i32
    %c1_i32 = arith.constant 1 : i32
    %c0_i32_14 = arith.constant 0 : i32
    %23 = tpu.memref_slice %arg3[%c0_i32, %c0_i32_13, %c1_i32, %c0_i32_14] : memref<2x3x16x128xf32, #tpu.memory_space<any>> -> memref<2x3x4x128xf32, #tpu.memory_space<any>>
    tpu.enqueue_dma source(%arg4 : memref<2x3x4x128xf32, #tpu.memory_space<vmem>>) target(%23 : memref<2x3x4x128xf32, #tpu.memory_space<any>>) target_semaphore(%arg5 : memref<!tpu.dma_semaphore, #tpu.memory_space<semaphore_mem>>)
    %c0_i32_15 = arith.constant 0 : i32
    %c0_i32_16 = arith.constant 0 : i32
    %c1_i32_17 = arith.constant 1 : i32
    %c0_i32_18 = arith.constant 0 : i32
    %24 = tpu.memref_slice %arg3[%c0_i32_15, %c0_i32_16, %c1_i32_17, %c0_i32_18] : memref<2x3x16x128xf32, #tpu.memory_space<any>> -> memref<2x3x4x128xf32, #tpu.memory_space<any>>
    tpu.wait_dma2 semaphore(%arg5 : memref<!tpu.dma_semaphore, #tpu.memory_space<semaphore_mem>>) src(%arg4 : memref<2x3x4x128xf32, #tpu.memory_space<vmem>>) dst(%24 : memref<2x3x4x128xf32, #tpu.memory_space<any>>)
    return
  }
}

</mosaic_0001>

<bundles_post_ra>
// kernel: prompt_learner_forward.1
= control target key start
LH: loop header
LB: loop body
LE: loop exit
PB: predicated region body
PF: predicated region fallthrough
CT: control target
= control target key end

     0   :  { %v406_v0 = vmov 0.0|0.0   ;;  %vm407_vm0 = vmmov 0   ;;  %v408_v4 = vmov 0.0   ;;  %vm26_vm1 = vcmask 523264   ;;  %s410_s11 = smov [#allocation2]   ;;  %s555_s2 = inlined_call_operand.hbm [shape: f32[2,3,16,128], index: 2, kind: input, shape index: {}, may-alias: {2,3}]   ;;  %s556_s1 = inlined_call_operand.vmem [shape: f32[216,128], index: 1, kind: input, shape index: {}]   ;;  %s557_s0 = inlined_call_operand.vmem [shape: f32[2,64], index: 0, kind: input, shape index: {}]   ;;  %s558_s3 = inlined_call_operand.hbm [shape: f32[2,3,16,128], index: 3, kind: output, shape index: {}, may-alias: {2,3}]  }
   0x1   :  { %335 = vmatprep.subr.bf16.mxu0 %v406_v0  ;;  %v13_v1 = vld [vmem:[%s556_s1] sm:$0xff]  ;;  %v14_v2 = vld [vmem:[%s556_s1 + $0x8] sm:$0xff]  ;;  %v15_v3 = vld [vmem:[%s556_s1 + $0x10] sm:$0xff]  ;;  %297 = vmatprep.mubr.msk.f32.mxu0 %vm407_vm0, %v408_v4  ;;  %v409_v44 = vmov 1966171168   ;;  %v197_v46 = vlaneseq  ;;  %s236_s12 = sshll.u32 %s410_s11, 4  ;;  %s535_s12 = int_to_ptr.vmem [resolvable:$true] %s236_s12 }
   0x2   :  { %v336_v5 = vpack.c.bf16 %v14_v2, %v13_v1  ;;  %v16_v6 = vld [vmem:[%s556_s1 + $0x18] sm:$0xff]  ;;  %347 = vmatprep.subr.bf16.mxu1 %v406_v0  ;;  %332 = vmatprep.mubr.msk.f32.mxu1 %vm407_vm0, %v408_v4  ;;  %v101_v8 = vld [vmem:[%s556_s1 + $0x48] sm:$0xff]  ;;  %v102_v9 = vld [vmem:[%s556_s1 + $0x50] sm:$0xff]  ;;  %v195_v45 = vunpack.c.l.s4 %v409_v44  ;;  %s533_s15 = scalar_lea.hbm %s558_s3, 16  ;;  %p384_p1 = scmp.lt.s32.totalorder %s535_s12, %s535_s12 }
   0x3   :  { %v339_v7 = vpack.c.bf16 %v16_v6, %v15_v3  ;;  %v103_v10 = vld [vmem:[%s556_s1 + $0x58] sm:$0xff]  ;;  %v17_v11 = vld [vmem:[%s556_s1 + $0x20] sm:$0xff]  ;;  %v18_v12 = vld [vmem:[%s556_s1 + $0x28] sm:$0xff]  ;;  %v348_v13 = vpack.c.bf16 %v102_v9, %v101_v8  ;;  %v198_v48 = vshrl.u32 %v197_v46, 7 }
   0x4   :  { %337 = vmatpush3.bf16.msra.mxu0 %v336_v5  ;;  %v104_v14 = vld [vmem:[%s556_s1 + $0x60] sm:$0xff]  ;;  %v342_v16 = vpack.c.bf16 %v18_v12, %v17_v11  ;;  %v105_v17 = vld [vmem:[%s556_s1 + $0x68] sm:$0xff]  ;;  %v106_v18 = vld [vmem:[%s556_s1 + $0x70] sm:$0xff]  ;;  %v196_v47 = vunpack.c.0.s8 %v195_v45 }
   0x5   :  { %338 = vmatprep.subr.bf16.mxu0 %v406_v0  ;;  %349 = vmatpush3.bf16.msra.mxu1 %v348_v13  ;;  %v351_v15 = vpack.c.bf16 %v104_v14, %v103_v10  ;;  %v19_v19 = vld [vmem:[%s556_s1 + $0x30] sm:$0xff]  ;;  %v20_v20 = vld [vmem:[%s556_s1 + $0x38] sm:$0xff]  ;;  %v354_v21 = vpack.c.bf16 %v106_v18, %v105_v17  ;;  %v108_v24 = vld [vmem:[%s556_s1 + $0x80] sm:$0xff]  ;;  %v218_v55 = vsub.s32 0, %v198_v48 }
   0x6   :  { %350 = vmatprep.subr.bf16.mxu1 %v406_v0  ;;  %v345_v22 = vpack.c.bf16 %v20_v20, %v19_v19  ;;  %v107_v23 = vld [vmem:[%s556_s1 + $0x78] sm:$0xff]  ;;  %v12_v26 = vld [vmem:[%s557_s0] sm:$0x3]  ;;  %v109_v27 = vld [vmem:[%s556_s1 + $0x88] sm:$0xff]  ;;  %v199_v50 = vsub.s32 %v196_v47, %v198_v48 }
   0x7   :  { %v357_v25 = vpack.c.bf16 %v108_v24, %v107_v23  ;;  %v110_v28 = vld [vmem:[%s556_s1 + $0x90] sm:$0xff]  ;;  %v111_v30 = vld [vmem:[%s556_s1 + $0x98] sm:$0xff]  ;;  %v112_v31 = vld [vmem:[%s556_s1 + $0xa0] sm:$0xff] }
   0x8   :  { %340 = vmatpush3.bf16.msra.mxu0 %v339_v7  ;;  %v360_v29 = vpack.c.bf16 %v110_v28, %v109_v27  ;;  %v363_v32 = vpack.c.bf16 %v112_v31, %v111_v30  ;;  %v113_v33 = vld [vmem:[%s556_s1 + $0xa8] sm:$0xff]  ;;  %v114_v34 = vld [vmem:[%s556_s1 + $0xb0] sm:$0xff]  ;;  %v115_v36 = vld [vmem:[%s556_s1 + $0xb8] sm:$0xff] }
   0x9   :  { %341 = vmatprep.subr.bf16.mxu0 %v406_v0  ;;  %352 = vmatpush3.bf16.msra.mxu1 %v351_v15  ;;  %v366_v35 = vpack.c.bf16 %v114_v34, %v113_v33  ;;  %v116_v37 = vld [vmem:[%s556_s1 + $0xc0] sm:$0xff]  ;;  %v253_v49 = vld [vmem:[%s556_s1 + $0xc8] ss:$0 sm:$0xff]  ;;  %v192_v58 = vld [vmem:[%s556_s1 + $0xd0] sm:$0xf] }
   0xa   :  { %353 = vmatprep.subr.bf16.mxu1 %v406_v0  ;;  %v369_v38 = vpack.c.bf16 %v116_v37, %v115_v36  ;;  %v251_v39 = vld [vmem:[%s556_s1 + $0x40] ss:$0 sm:$0xff]  ;;  %s379_s1 = scalar_lea.vmem %s535_s12, 384 }
   0xb   :  { %p380_p0 = scmp.ne.s32.totalorder %s535_s12, %s379_s1  ;;  %p385_p2 = scmp.lt.s32.totalorder %s379_s1, %s379_s1 }
   0xc   :  { %343 = vmatpush3.bf16.msra.mxu0 %v342_v16 }
   0xd   :  { %344 = vmatprep.subr.bf16.mxu0 %v406_v0  ;;  %355 = vmatpush3.bf16.msra.mxu1 %v354_v21  ;;  %p386_p3 = por %p385_p2, %p384_p1 }
   0xe   :  { %356 = vmatprep.subr.bf16.mxu1 %v406_v0 }
   0xf   :  { %p387_p4 = pnand %p386_p3, %p380_p0 }
  0x10   :  { %346 = vmatpush3.bf16.msra.mxu0 %v345_v22 }
  0x11   :  { %358 = vmatpush3.bf16.msra.mxu1 %v357_v25 }
  0x12   :  { %359 = vmatprep.subr.bf16.mxu1 %v406_v0 }
  0x13   :  { %298 = vmatmul.mubr.msk.f32.vlgmr.msra.gmra.mrb[0].mxu0 %vm26_vm1, %v12_v26 }
  0x15   :  { %361 = vmatpush3.bf16.msra.mxu1 %v360_v29 }
  0x16   :  { %362 = vmatprep.subr.bf16.mxu1 %v406_v0 }
  0x19   :  { %364 = vmatpush3.bf16.msra.mxu1 %v363_v32 }
  0x1a   :  { %365 = vmatprep.subr.bf16.mxu1 %v406_v0 }
  0x1d   :  { %367 = vmatpush3.bf16.msra.mxu1 %v366_v35 }
  0x1e   :  { %368 = vmatprep.subr.bf16.mxu1 %v406_v0 }
  0x21   :  { %370 = vmatpush3.bf16.msra.mxu1 %v369_v38 }
  0xe6   :  { %v96_v40 = vpop.f32.mrb[0].mxu0 }
  0xe7   :  { %v97_v41 = vadd.f32 %v251_v39, %v96_v40  ;;  %v299_v42 = vpop.f32.mrb[1].mxu0 }
  0xe9   :  { %v100_v43 = vmax.f32 %v97_v41, 0.0 }
  0xeb   :  { %333 = vmatmul.mubr.f32.vlgmr.msra.gmra.mrb[0].mxu1 %v100_v43 }
 0x1be   :  { %v188_v51 = vpop.f32.mrb[0].mxu1 }
 0x1bf   :  { %v189_v52 = vadd.f32 %v253_v49, %v188_v51  ;;  %v334_v53 = vpop.f32.mrb[1].mxu1 }
 0x1c1   :  { %v200_v54 = vrot.slane %v189_v52, %v199_v50 }
 0x1c3   :  { %v201_v56 = vcombine.high %v200_v54, %v200_v54  ;;  %v208_v57 = vrot.slane %v200_v54, %v199_v50 }
 0x1c5   :  { %v215_v59 = vrot.slane %v201_v56, %v199_v50  ;;  %v219_v60 = vrot.slane %v208_v57, %v218_v55 }
 0x1c7   :  { %v223_v61 = vrot.slane %v215_v59, %v218_v55  ;;  %v226_v62 = vadd.f32 %v219_v60, %v192_v58 }
 0x1c9   :  { %v227_v63 = vadd.f32 %v223_v61, %v192_v58  ;;  %228 = vst [vmem:[#allocation2] sm:$0xf] %v226_v62  ;;  %229 = vst [vmem:[#allocation2 + $0x4] sm:$0xf] %v226_v62 }
 0x1ca   :  { %230 = vst [vmem:[#allocation2 + $0x8] sm:$0xf] %v226_v62 }
 0x1cb   :  { %231 = vst [vmem:[#allocation2 + $0xc] sm:$0xf] %v227_v63  ;;  %232 = vst [vmem:[#allocation2 + $0x10] sm:$0xf] %v227_v63 }
 0x1cc   :  { %233 = vst [vmem:[#allocation2 + $0x14] sm:$0xf] %v227_v63 }
 0x1cd   :  { %390 = shalt.err (!%p387_p4)  }
 0x1ce   :  { %s403_s17 = scalar_lea.hbm %s558_s3, 400  ;;  %s393_s20 = scalar_lea.hbm %s558_s3, 1536 }
 0x1cf   :  { %p392_p5 = scmp.ne.s32.totalorder %s533_s15, %s403_s17  ;;  %p394_p6 = scmp.lt.u32.totalorder %s533_s15, %s558_s3 }
 0x1d0   :  { %p395_p7 = scmp.lt.u32.totalorder %s393_s20, %s403_s17  ;;  %p397_p9 = scmp.lt.u32.totalorder %s403_s17, %s533_s15 }
 0x1d2   :  { %p396_p8 = por %p395_p7, %p394_p6 }
 0x1d4   :  { %p398_p10 = por %p397_p9, %p396_p8 }
 0x1d6   :  { %p399_p11 = pnand %p398_p10, %p392_p5 }
 0x1d8   :  { %402 = shalt.err (!%p399_p11)  }
 0x1d9   :  { %s411_s0 = smov 64   ;;  %s412_s23 = smov 256  }
 0x1da   :  { %s413_s24 = smov 4  }
 0x1db   :  { %239 = dma.vmem_to_hbm [thread:$0]  %s535_s12, 384, %s533_s15, [#allocation3], %s411_s0, %s412_s23, %s413_s24 }
 0x1dc   :  { %404 = dma.done.wait [#allocation3], 384 }
 0x1dd   :  { %405 = vsyncadd [#allocation3], 4294966912 }
 0x1de   :  { %245 = vsyncmov [#allocation3] }
 0x1e1   :  { %s246_s25 = vpop.sfrf %245 }
 0x1e2   :  { %p254_p12 = scmp.ne.s32.totalorder %s246_s25, 0 }
 0x1e4   :  { %250 = shalt.err (%p254_p12)  }

</bundles_post_ra>
